<compile_context>
chip_gen: v7x
topology: tpu7x:2x2x1
jax: 0.10.0
libtpu: 0.0.40
codegen_flags: <defaults>
</compile_context>

<pallas_src>
import functools

import jax
import jax.numpy as jnp
from jax.experimental import pallas as pl
from jax.experimental.pallas import tpu as pltpu


def _round_up(x, m):
    return ((x + m - 1) // m) * m


def _ffn_kernel(x_ref, w1_ref, b1_ref, w2_ref, b2_ref, o_ref, acc_ref):
    """One (batch-tile, hidden-tile) step of  out = ReLU(x@W1 + b1) @ W2 + b2.

    The hidden axis (grid axis 1) is a reduction for the second matmul, so a
    f32 VMEM accumulator is carried across it; the output tile is written only
    on the last hidden step (lane-dense, padded-C store).
    """
    k = pl.program_id(1)

    @pl.when(k == 0)
    def _init():
        acc_ref[...] = jnp.zeros_like(acc_ref)

    # fc1 tile: MXU matmul with f32 accumulation, then bias + ReLU on the VPU.
    h = jnp.dot(x_ref[...], w1_ref[...], preferred_element_type=jnp.float32)
    h = jnp.maximum(h + b1_ref[...], 0.0)

    # Partial fc2 contribution of this hidden tile (bf16 in, f32 accumulate).
    acc_ref[...] += jnp.dot(h.astype(w2_ref.dtype), w2_ref[...],
                            preferred_element_type=jnp.float32)

    @pl.when(k == pl.num_programs(1) - 1)
    def _finalize():
        o_ref[...] = (acc_ref[...] + b2_ref[...]).astype(o_ref.dtype)


@functools.partial(jax.jit, static_argnames=("block_b", "block_h", "compute_dtype"))
def feedforward(x, w1, b1, w2, b2, *, block_b=128, block_h=512,
                compute_dtype=jnp.bfloat16):
    """x: [B, D_in]; w1: [D_in, H]; b1: [1, H]; w2: [H, C]; b2: [1, C]."""
    B, D_in = x.shape
    H = w1.shape[1]
    C = w2.shape[1]
    out_dtype = x.dtype

    # ---- Tile / padded sizes -------------------------------------------------
    c_pad = _round_up(C, 128)                       # lane-dense output stores
    blk_h = min(block_h, _round_up(H, 128))         # hidden (reduction) tile
    h_pad = _round_up(H, blk_h)
    blk_b = min(block_b, _round_up(B, 8))           # don't over-pad tiny batches
    b_pad = _round_up(B, blk_b)

    # ---- Pad + cast operands (bf16 matmul inputs, f32 biases) ----------------
    xp = jnp.pad(x, ((0, b_pad - B), (0, 0))).astype(compute_dtype)
    w1p = jnp.pad(w1, ((0, 0), (0, h_pad - H))).astype(compute_dtype)
    b1p = jnp.pad(b1.reshape(1, H), ((0, 0), (0, h_pad - H))).astype(jnp.float32)
    w2p = jnp.pad(w2, ((0, h_pad - H), (0, c_pad - C))).astype(compute_dtype)
    b2p = jnp.pad(b2.reshape(1, C), ((0, 0), (0, c_pad - C))).astype(jnp.float32)

    grid = (b_pad // blk_b, h_pad // blk_h)

    # ---- VMEM budget: double-buffered pipelined tiles + accumulator ----------
    esz = jnp.dtype(compute_dtype).itemsize
    osz = jnp.dtype(out_dtype).itemsize
    tile_bytes = (blk_b * D_in * esz        # x tile
                  + D_in * blk_h * esz      # W1 tile
                  + blk_h * 4               # b1 tile (f32)
                  + blk_h * c_pad * esz     # W2 tile
                  + c_pad * 4               # b2 tile (f32)
                  + blk_b * c_pad * osz)    # out tile
    vmem_need = 2 * tile_bytes + blk_b * c_pad * 4 + (2 << 20)   # + headroom
    vmem_limit = int(min(max(vmem_need, 32 << 20), 64 << 20))    # v7x-safe cap

    cost = pl.CostEstimate(
        flops=2 * b_pad * h_pad * (D_in + c_pad),
        transcendentals=0,
        bytes_accessed=(xp.size * esz + w1p.size * esz + w2p.size * esz
                        + b1p.size * 4 + b2p.size * 4 + b_pad * c_pad * osz),
    )

    out = pl.pallas_call(
        _ffn_kernel,
        out_shape=jax.ShapeDtypeStruct((b_pad, c_pad), out_dtype),
        grid_spec=pltpu.PrefetchScalarGridSpec(
            num_scalar_prefetch=0,
            grid=grid,
            in_specs=[
                pl.BlockSpec((blk_b, D_in), lambda i, k: (i, 0)),    # x tile
                pl.BlockSpec((D_in, blk_h), lambda i, k: (0, k)),    # W1 slice
                pl.BlockSpec((1, blk_h), lambda i, k: (0, k)),       # b1 slice
                pl.BlockSpec((blk_h, c_pad), lambda i, k: (k, 0)),   # W2 slice
                pl.BlockSpec((1, c_pad), lambda i, k: (0, 0)),       # b2
            ],
            out_specs=pl.BlockSpec((blk_b, c_pad), lambda i, k: (i, 0)),
            scratch_shapes=[pltpu.VMEM((blk_b, c_pad), jnp.float32)],
        ),
        compiler_params=pltpu.CompilerParams(
            dimension_semantics=("parallel", "arbitrary"),
            vmem_limit_bytes=vmem_limit,
        ),
        cost_estimate=cost,
    )(xp, w1p, b1p, w2p, b2p)

    return out[:B, :C]


def init_params(key, input_dim, hidden_size, no_output_classes, dtype=jnp.float32):
    """Deterministic init matching nn.Linear's U(-1/sqrt(fan_in), 1/sqrt(fan_in))."""
    k1, k2, k3, k4 = jax.random.split(key, 4)
    bound1 = 1.0 / jnp.sqrt(input_dim)
    bound2 = 1.0 / jnp.sqrt(hidden_size)
    w1 = jax.random.uniform(k1, (input_dim, hidden_size), dtype, -bound1, bound1)
    b1 = jax.random.uniform(k2, (1, hidden_size), dtype, -bound1, bound1)
    w2 = jax.random.uniform(k3, (hidden_size, no_output_classes), dtype, -bound2, bound2)
    b2 = jax.random.uniform(k4, (1, no_output_classes), dtype, -bound2, bound2)
    return w1, b1, w2, b2


def _reference(x, w1, b1, w2, b2, compute_dtype=jnp.bfloat16):
    """Pure-JAX reference following the same bf16-in / f32-accumulate path."""
    xb = x.astype(compute_dtype)
    h = jnp.dot(xb, w1.astype(compute_dtype), preferred_element_type=jnp.float32)
    h = jnp.maximum(h + b1.astype(jnp.float32), 0.0)
    o = jnp.dot(h.astype(compute_dtype), w2.astype(compute_dtype),
                preferred_element_type=jnp.float32)
    return (o + b2.astype(jnp.float32)).astype(x.dtype)


if __name__ == "__main__":
    # TODO(synk): training loop (fit/SGD/CrossEntropy) and accuracy helpers of
    # the PyTorch module are host-side utilities, not part of the forward pass.
    key = jax.random.PRNGKey(0)

    # Case 1: tiny shapes consistent with the module's toy forward.
    batch, input_dim, hidden, classes = 8, 32, 64, 10
    kx, kp, key = jax.random.split(key, 3)
    x = jax.random.normal(kx, (batch, input_dim), dtype=jnp.float32)
    w1, b1, w2, b2 = init_params(kp, input_dim, hidden, classes)
    out = jax.block_until_ready(feedforward(x, w1, b1, w2, b2))
    ref = _reference(x, w1, b1, w2, b2)
    assert out.shape == (batch, classes)
    assert jnp.allclose(out, ref, atol=2e-3, rtol=2e-3), \
        float(jnp.max(jnp.abs(out - ref)))

    # Case 2: exercises batch padding (272 not a multiple of 128) and a
    # 2-step hidden reduction (hidden=512, block_h=256) with the accumulator.
    batch, input_dim, hidden, classes = 272, 96, 512, 10
    kx, kp = jax.random.split(key)
    x = jax.random.normal(kx, (batch, input_dim), dtype=jnp.float32)
    w1, b1, w2, b2 = init_params(kp, input_dim, hidden, classes)
    out = jax.block_until_ready(feedforward(x, w1, b1, w2, b2, block_h=256))
    ref = _reference(x, w1, b1, w2, b2)
    ref_f32 = jnp.maximum(x @ w1 + b1, 0.0) @ w2 + b2
    assert out.shape == (batch, classes)
    assert jnp.allclose(out, ref, atol=2e-3, rtol=2e-3), \
        float(jnp.max(jnp.abs(out - ref)))
    assert jnp.allclose(out, ref_f32, atol=0.1, rtol=0.1)   # bf16-vs-f32 sanity

    print("KERNEL_OK")
</pallas_src>

<mosaic_0001>
module attributes {stable_mosaic.version = 11 : i64} {
  func.func @_ffn_kernel(%arg0: i32, %arg1: i32, %arg2: memref<8x32xbf16, #tpu.memory_space<vmem>>, %arg3: memref<32x128xbf16, #tpu.memory_space<vmem>>, %arg4: memref<1x128xf32, #tpu.memory_space<vmem>>, %arg5: memref<128x128xbf16, #tpu.memory_space<vmem>>, %arg6: memref<1x128xf32, #tpu.memory_space<vmem>>, %arg7: memref<8x128xf32, #tpu.memory_space<vmem>>, %arg8: memref<8x128xf32, #tpu.memory_space<vmem>>) attributes {dimension_semantics = [#tpu.dimension_semantics<parallel>, #tpu.dimension_semantics<arbitrary>], iteration_bounds = array<i64: 1, 1>, scalar_prefetch = 0 : i64, scratch_operands = 1 : i64, tpu.core_type = #tpu.core_type<tc>, window_params = [{transform_indices = @transform_0, window_bounds = array<i64: 8, 32>}, {transform_indices = @transform_1, window_bounds = array<i64: 32, 128>}, {transform_indices = @transform_2, window_bounds = array<i64: 1, 128>}, {transform_indices = @transform_3, window_bounds = array<i64: 128, 128>}, {pipeline_mode = #tpu.pipeline_mode<synchronous>, transform_indices = @transform_4, window_bounds = array<i64: 1, 128>}, {transform_indices = @transform_5, window_bounds = array<i64: 8, 128>}]} {
    %c0_i32 = arith.constant 0 : i32
    %0 = arith.cmpi eq, %arg1, %c0_i32 : i32
    %1 = arith.extui %0 : i1 to i32
    %c0_i32_0 = arith.constant 0 : i32
    %2 = arith.cmpi ne, %1, %c0_i32_0 : i32
    scf.if %2 {
      %cst_16 = arith.constant 0.000000e+00 : f32
      %20 = vector.broadcast %cst_16 : f32 to vector<8x128xf32>
      %c0_17 = arith.constant 0 : index
      %c0_18 = arith.constant 0 : index
      %21 = vector.load %arg8[%c0_17, %c0_18] : memref<8x128xf32, #tpu.memory_space<vmem>>, vector<8x128xf32>
      tpu.vector_store %arg8[%c0_17, %c0_18], %20 {strides = array<i32>} : memref<8x128xf32, #tpu.memory_space<vmem>>, vector<8x128xf32>,
    } else {
    }
    %c0 = arith.constant 0 : index
    %c0_1 = arith.constant 0 : index
    %3 = vector.load %arg2[%c0, %c0_1] : memref<8x32xbf16, #tpu.memory_space<vmem>>, vector<8x32xbf16>
    %c0_2 = arith.constant 0 : index
    %c0_3 = arith.constant 0 : index
    %4 = vector.load %arg3[%c0_2, %c0_3] : memref<32x128xbf16, #tpu.memory_space<vmem>>, vector<32x128xbf16>
    %cst = arith.constant dense<0.000000e+00> : vector<8x128xf32>
    %5 = tpu.matmul %3, %4, %cst {dimension_numbers = #tpu.dot_dimension_numbers<[1], [0], [0], [1], [0, 0, 1, 1], [], []>} : vector<8x32xbf16>, vector<32x128xbf16>, vector<8x128xf32> -> vector<8x128xf32>
    %c0_4 = arith.constant 0 : index
    %c0_5 = arith.constant 0 : index
    %6 = vector.load %arg4[%c0_4, %c0_5] : memref<1x128xf32, #tpu.memory_space<vmem>>, vector<1x128xf32>
    %7 = vector.broadcast %6 : vector<1x128xf32> to vector<8x128xf32>
    %8 = arith.addf %5, %7 : vector<8x128xf32>
    %cst_6 = arith.constant 0.000000e+00 : f32
    %9 = vector.broadcast %cst_6 : f32 to vector<8x128xf32>
    %10 = arith.maximumf %8, %9 : vector<8x128xf32>
    %c0_7 = arith.constant 0 : index
    %c0_8 = arith.constant 0 : index
    %11 = vector.load %arg8[%c0_7, %c0_8] : memref<8x128xf32, #tpu.memory_space<vmem>>, vector<8x128xf32>
    %12 = arith.truncf %10 : vector<8x128xf32> to vector<8x128xbf16>
    %c0_9 = arith.constant 0 : index
    %c0_10 = arith.constant 0 : index
    %13 = vector.load %arg5[%c0_9, %c0_10] : memref<128x128xbf16, #tpu.memory_space<vmem>>, vector<128x128xbf16>
    %cst_11 = arith.constant dense<0.000000e+00> : vector<8x128xf32>
    %14 = tpu.matmul %12, %13, %cst_11 {dimension_numbers = #tpu.dot_dimension_numbers<[1], [0], [0], [1], [0, 0, 1, 1], [], []>} : vector<8x128xbf16>, vector<128x128xbf16>, vector<8x128xf32> -> vector<8x128xf32>
    %15 = arith.addf %11, %14 : vector<8x128xf32>
    %c0_12 = arith.constant 0 : index
    %c0_13 = arith.constant 0 : index
    %16 = vector.load %arg8[%c0_12, %c0_13] : memref<8x128xf32, #tpu.memory_space<vmem>>, vector<8x128xf32>
    tpu.vector_store %arg8[%c0_12, %c0_13], %15 {strides = array<i32>} : memref<8x128xf32, #tpu.memory_space<vmem>>, vector<8x128xf32>,
    %c0_i32_14 = arith.constant 0 : i32
    %17 = arith.cmpi eq, %arg1, %c0_i32_14 : i32
    %18 = arith.extui %17 : i1 to i32
    %c0_i32_15 = arith.constant 0 : i32
    %19 = arith.cmpi ne, %18, %c0_i32_15 : i32
    scf.if %19 {
      %c0_16 = arith.constant 0 : index
      %c0_17 = arith.constant 0 : index
      %20 = vector.load %arg8[%c0_16, %c0_17] : memref<8x128xf32, #tpu.memory_space<vmem>>, vector<8x128xf32>
      %c0_18 = arith.constant 0 : index
      %c0_19 = arith.constant 0 : index
      %21 = vector.load %arg6[%c0_18, %c0_19] : memref<1x128xf32, #tpu.memory_space<vmem>>, vector<1x128xf32>
      %22 = vector.broadcast %21 : vector<1x128xf32> to vector<8x128xf32>
      %23 = arith.addf %20, %22 : vector<8x128xf32>
      %c0_20 = arith.constant 0 : index
      %c0_21 = arith.constant 0 : index
      %24 = vector.load %arg7[%c0_20, %c0_21] : memref<8x128xf32, #tpu.memory_space<vmem>>, vector<8x128xf32>
      tpu.vector_store %arg7[%c0_20, %c0_21], %23 {strides = array<i32>} : memref<8x128xf32, #tpu.memory_space<vmem>>, vector<8x128xf32>,
    } else {
    }
    return
  }
  func.func @transform_0(%arg0: i32, %arg1: i32) -> (i32, i32) {
    %c0_i32 = arith.constant 0 : i32
    %c0_i32_0 = arith.constant 0 : i32
    return %arg0, %c0_i32 : i32, i32
  }
  func.func @transform_1(%arg0: i32, %arg1: i32) -> (i32, i32) {
    %c0_i32 = arith.constant 0 : i32
    %c0_i32_0 = arith.constant 0 : i32
    return %c0_i32, %arg1 : i32, i32
  }
  func.func @transform_2(%arg0: i32, %arg1: i32) -> (i32, i32) {
    %c0_i32 = arith.constant 0 : i32
    %c0_i32_0 = arith.constant 0 : i32
    return %c0_i32, %arg1 : i32, i32
  }
  func.func @transform_3(%arg0: i32, %arg1: i32) -> (i32, i32) {
    %c0_i32 = arith.constant 0 : i32
    %c0_i32_0 = arith.constant 0 : i32
    return %arg1, %c0_i32 : i32, i32
  }
  func.func @transform_4(%arg0: i32, %arg1: i32) -> (i32, i32) {
    %c0_i32 = arith.constant 0 : i32
    %c0_i32_0 = arith.constant 0 : i32
    %c0_i32_1 = arith.constant 0 : i32
    return %c0_i32, %c0_i32_0 : i32, i32
  }
  func.func @transform_5(%arg0: i32, %arg1: i32) -> (i32, i32) {
    %c0_i32 = arith.constant 0 : i32
    %c0_i32_0 = arith.constant 0 : i32
    return %arg0, %c0_i32 : i32, i32
  }
}

</mosaic_0001>

<bundles_post_ra>
// kernel: feedforward.1
= control target key start
LH: loop header
LB: loop body
LE: loop exit
PB: predicated region body
PF: predicated region fallthrough
CT: control target
= control target key end

     0   :  { %v321_v1 = vmov 0.0   ;;  %vm322_vm0 = vmmov 0   ;;  %vm51_vm1 = vcmask 261120   ;;  %s405_s0 = inlined_call_operand.vmem [shape: bf16[8,32], index: 0, kind: input, shape index: {}]   ;;  %s406_s1 = inlined_call_operand.vmem [shape: bf16[32,128], index: 1, kind: input, shape index: {}]   ;;  %s407_s2 = inlined_call_operand.vmem [shape: f32[1,128], index: 2, kind: input, shape index: {}]   ;;  %s408_s3 = inlined_call_operand.vmem [shape: bf16[128,128], index: 3, kind: input, shape index: {}]   ;;  %s409_s4 = inlined_call_operand.vmem [shape: f32[1,128], index: 4, kind: input, shape index: {}]   ;;  %s410_s5 = inlined_call_operand.hbm [shape: f32[8,128], index: 5, kind: output, shape index: {}]  }
   0x1   :  { %v287_v0 = vld [vmem:[%s406_s1] sm:$0xff]   ;;  %256 = vmatprep.subr.bf16.mxu0 %v321_v1  ;;  %264 = vmatprep.subr.bf16.mxu1 %v321_v1  ;;  %v288_v2 = vld [vmem:[%s406_s1 + $0x8] sm:$0xff]   ;;  %v291_v6 = vld [vmem:[%s408_s3 + $0x10] sm:$0xff]  }
   0x2   :  { %257 = vmatpush3.bf16.msra.mxu0 %v287_v0  ;;  %260 = vmatprep.mubr.msk.bf16.mxu0 %vm322_vm0, %v321_v1  ;;  %v289_v3 = vld [vmem:[%s408_s3] sm:$0xff]   ;;  %v290_v4 = vld [vmem:[%s408_s3 + $0x8] sm:$0xff]  }
   0x3   :  { %258 = vmatprep.subr.bf16.mxu0 %v321_v1  ;;  %280 = vmatprep.mubr.msk.bf16.mxu1 %vm322_vm0, %v321_v1  ;;  %v27_v5 = vld [vmem:[%s405_s0] sm:$0xf] }
   0x4   :  { %265 = vmatpush3.bf16.msra.mxu1 %v289_v3 }
   0x5   :  { %266 = vmatprep.subr.bf16.mxu1 %v321_v1 }
   0x6   :  { %259 = vmatpush3.bf16.msra.mxu0 %v288_v2 }
   0x8   :  { %267 = vmatpush3.bf16.msra.mxu1 %v290_v4 }
   0x9   :  { %261 = vmatmul.mubr.msk.bf16.vlgmr.msra.gmra.mrb[0].mxu0 %vm51_vm1, %v27_v5  ;;  %268 = vmatprep.subr.bf16.mxu1 %v321_v1 }
   0xa   :  { %10 = vsyncpa [#allocation4], 0  ;;  %v292_v7 = vld [vmem:[%s408_s3 + $0x18] sm:$0xff]   ;;  %v293_v8 = vld [vmem:[%s408_s3 + $0x20] sm:$0xff]   ;;  %s323_s17 = smov [#allocation3]  }
   0xb   :  { %v294_v9 = vld [vmem:[%s408_s3 + $0x28] sm:$0xff]   ;;  %v295_v10 = vld [vmem:[%s408_s3 + $0x30] sm:$0xff]   ;;  %v296_v11 = vld [vmem:[%s408_s3 + $0x38] sm:$0xff]   ;;  %s223_s18 = sshll.u32 %s323_s17, 4  ;;  %s224_s18 = int_to_ptr.vmem [resolvable:$true] %s223_s18 }
   0xc   :  { %269 = vmatpush3.bf16.msra.mxu1 %v291_v6  ;;  %v231_v12 = vld [vmem:[%s407_s2] ss:$0 sm:$0xff]  ;;  %s297_s2 = scalar_lea.vmem %s224_s18, 128  ;;  %p302_p1 = scmp.lt.s32.totalorder %s224_s18, %s224_s18 }
   0xd   :  { %270 = vmatprep.subr.bf16.mxu1 %v321_v1  ;;  %v243_v20 = vld [vmem:[%s409_s4] ss:$0 sm:$0xff]  ;;  %p298_p0 = scmp.ne.s32.totalorder %s224_s18, %s297_s2  ;;  %p303_p2 = scmp.lt.s32.totalorder %s297_s2, %s297_s2 }
   0xf   :  { %p304_p3 = por %p303_p2, %p302_p1 }
  0x10   :  { %271 = vmatpush3.bf16.msra.mxu1 %v292_v7 }
  0x11   :  { %272 = vmatprep.subr.bf16.mxu1 %v321_v1  ;;  %p305_p4 = pnand %p304_p3, %p298_p0 }
  0x14   :  { %273 = vmatpush3.bf16.msra.mxu1 %v293_v8 }
  0x15   :  { %274 = vmatprep.subr.bf16.mxu1 %v321_v1 }
  0x18   :  { %275 = vmatpush3.bf16.msra.mxu1 %v294_v9 }
  0x19   :  { %276 = vmatprep.subr.bf16.mxu1 %v321_v1 }
  0x1c   :  { %277 = vmatpush3.bf16.msra.mxu1 %v295_v10 }
  0x1d   :  { %278 = vmatprep.subr.bf16.mxu1 %v321_v1 }
  0x20   :  { %279 = vmatpush3.bf16.msra.mxu1 %v296_v11 }
  0xdc   :  { %v89_v13 = vpop.f32.mrb[0].mxu0 }
  0xdd   :  { %v90_v14 = vadd.f32 %v231_v12, %v89_v13  ;;  %v262_v15 = vpop.f32.mrb[1].mxu0 }
  0xde   :  { %v92_v16 = vpop.f32.mrb[2].mxu0 }
  0xdf   :  { %v95_v17 = vmax.f32 %v90_v14, 0.0  ;;  %v263_v18 = vpop.f32.mrb[3].mxu0 }
  0xe1   :  { %v97_v19 = vpack.c.bf16 %v95_v17, %v95_v17 }
  0xe3   :  { %281 = vmatmul.mubr.bf16.vlgmr.msra.gmra.mrb[0].mxu1 %v97_v19 }
 0x1b6   :  { %v196_v21 = vpop.f32.mrb[0].mxu1 }
 0x1b7   :  { %v215_v22 = vadd.f32 %v243_v20, %v196_v21  ;;  %v282_v23 = vpop.f32.mrb[1].mxu1 }
 0x1b8   :  { %v199_v24 = vpop.f32.mrb[2].mxu1 }
 0x1b9   :  { %216 = vst [vmem:[#allocation3] sm:$0xff] %v215_v22  ;;  %v283_v25 = vpop.f32.mrb[3].mxu1 }
 0x1ba   :  { %308 = shalt.err (!%p305_p4)
}
 0x1bb   :  { %s309_s4 = scalar_lea.hbm %s410_s5, 128 }
 0x1bc   :  { %p310_p5 = scmp.ne.s32.totalorder %s410_s5, %s309_s4  ;;  %p313_p6 = scmp.lt.u32.totalorder %s309_s4, %s410_s5 }
 0x1be   :  { %p315_p7 = pnand %p313_p6, %p310_p5 }
 0x1c0   :  { %318 = shalt.err (!%p315_p7)
}
 0x1c1   :  { %226 = dma.vmem_to_hbm [thread:$0]  %s224_s18, 128, %s410_s5, [#allocation4]  }
 0x1c2   :  { %319 = dma.done.wait [#allocation4], 128  }
 0x1c3   :  { %320 = vsyncadd [#allocation4], 4294967168 }
 0x1c4   :  { %230 = vsyncpa [#allocation4], 1 }

</bundles_post_ra>
